<compile_context>
chip_gen: v7x
topology: tpu7x:2x2x1
jax: 0.10.0
libtpu: 0.0.40
codegen_flags: <defaults>
</compile_context>

<pallas_src>
import functools

import jax
import jax.numpy as jnp
from jax.experimental import pallas as pl
from jax.experimental.pallas import tpu as pltpu

LANE = 128


def _round_up(x, m):
    return ((x + m - 1) // m) * m


def fused_cnn_kernel(tok_ref, table_ref, wconv_ref, bconv_ref, thresh_ref,
                     w1_ref, b1_ref, w2_ref, b2_ref, out_ref,
                     *, B_TILE, S, FS_MAX):
    """Embedding gather + all conv branches + relu + max-pool + fc1 + fc2.

    tok_ref    : [B_TILE*S, 1] int32 token ids (row r = local_b*S + t)
    table_ref  : [V, E]            bf16 embedding table
    wconv_ref  : [FS_MAX, E, CAT_P] bf16 per-shift conv weights (branch-concat,
                                     zero-padded along lanes)
    bconv_ref  : [1, CAT_P] f32    concatenated conv biases (zero pad)
    thresh_ref : [1, CAT_P] int32  per-column valid-time threshold (S - fs)
    w1/b1/w2/b2: padded fc1 / fc2 params (weights bf16, biases f32)
    out_ref    : [B_TILE, 1, OUT_P] f32
    """
    BS_T = B_TILE * S
    V, E = table_ref.shape
    CAT_P = wconv_ref.shape[2]

    # ---- embedding lookup as one-hot matmul (stays on the MXU) -----------
    tok = tok_ref[...]                                               # [BS_T,1] i32
    vocab_iota = jax.lax.broadcasted_iota(jnp.int32, (BS_T, V), 1)   # [BS_T,V]
    onehot = jnp.where(vocab_iota == tok, 1.0, 0.0).astype(jnp.bfloat16)
    emb = jnp.dot(onehot, table_ref[...],
                  preferred_element_type=jnp.float32)                # [BS_T,E] f32
    # lossless: each row equals a bf16 table row exactly
    emb = emb.astype(jnp.bfloat16)

    # ---- conv branches: accumulation of FS_MAX shifted matmuls (K = E) ----
    # Rows whose window runs past a batch element pick up zero-padding /
    # next-batch rows; those positions are exactly the ones masked to zero
    # below (valid because ReLU outputs are >= 0).
    emb_p = jnp.concatenate(
        [emb, jnp.zeros((FS_MAX - 1, E), jnp.bfloat16)], axis=0)     # [BS_T+F-1,E]
    acc = jnp.zeros((BS_T, CAT_P), jnp.float32)
    for s in range(FS_MAX):
        acc = acc + jnp.dot(emb_p[s:s + BS_T, :], wconv_ref[s],
                            preferred_element_type=jnp.float32)      # [BS_T,CAT_P]

    # ---- bias + ReLU (f32 VPU), in-kernel validity mask, time max-pool ----
    conv = jnp.maximum(acc + bconv_ref[...], 0.0)                    # [BS_T,CAT_P]
    t_iota = jax.lax.broadcasted_iota(jnp.int32, (S, CAT_P), 0)
    valid = t_iota <= thresh_ref[...]                                # [S,CAT_P]
    convr = conv.reshape(B_TILE, S, CAT_P)
    convr = jnp.where(valid[None, :, :], convr, 0.0)
    pooled = jnp.max(convr, axis=1)                                  # [B_TILE,CAT_P]

    # ---- fc1 -> fc2 (dropout = identity at inference), lane-dense store ---
    h = jnp.dot(pooled.astype(jnp.bfloat16), w1_ref[...],
                preferred_element_type=jnp.float32) + b1_ref[...]
    out = jnp.dot(h.astype(jnp.bfloat16), w2_ref[...],
                  preferred_element_type=jnp.float32) + b2_ref[...]
    out_ref[...] = out.reshape(B_TILE, 1, out.shape[-1])


def pack_params(params):
    """One-time host-side layout plumbing (padding, concat, bf16 casts)."""
    filter_sizes = tuple(params["filter_sizes"])
    fs_max = max(filter_sizes)
    nb = len(filter_sizes)
    table = params["embedding"]
    V, E = table.shape
    F = params[f"conv_w_{filter_sizes[0]}"].shape[2]
    hid = params["fc1_w"].shape[1]
    out_dim = params["fc2_w"].shape[1]

    cat = nb * F
    cat_p = _round_up(cat, LANE)
    hid_p = _round_up(hid, LANE)
    out_p = _round_up(out_dim, LANE)

    # per-shift conv weights, branch-concatenated along lanes, zero-padded
    wconv = jnp.zeros((fs_max, E, cat_p), jnp.float32)
    bconv = jnp.zeros((1, cat_p), jnp.float32)
    for j, fs in enumerate(filter_sizes):
        w = params[f"conv_w_{fs}"].astype(jnp.float32)               # [fs, E, F]
        wconv = wconv.at[:fs, :, j * F:(j + 1) * F].set(w)
        bconv = bconv.at[0, j * F:(j + 1) * F].set(params[f"conv_b_{fs}"])

    fc1_w = jnp.zeros((cat_p, hid_p), jnp.float32).at[:cat, :hid].set(
        params["fc1_w"])
    fc1_b = jnp.zeros((1, hid_p), jnp.float32).at[0, :hid].set(params["fc1_b"])
    fc2_w = jnp.zeros((hid_p, out_p), jnp.float32).at[:hid, :out_dim].set(
        params["fc2_w"])
    fc2_b = jnp.zeros((1, out_p), jnp.float32).at[0, :out_dim].set(
        params["fc2_b"])

    return {
        "filter_sizes": filter_sizes,
        "fs_max": fs_max,
        "n_filters": F,
        "cat_p": cat_p,
        "hid_p": hid_p,
        "out_dim": out_dim,
        "out_p": out_p,
        "table": table.astype(jnp.bfloat16),
        "wconv": wconv.astype(jnp.bfloat16),
        "bconv": bconv,
        "fc1_w": fc1_w.astype(jnp.bfloat16),
        "fc1_b": fc1_b,
        "fc2_w": fc2_w.astype(jnp.bfloat16),
        "fc2_b": fc2_b,
    }


def cnn_forward(text, packed, *, b_tile=1):
    """text: [seq_len, batch] int32 token ids (PyTorch module convention)."""
    S, B = text.shape
    filter_sizes = packed["filter_sizes"]
    fs_max = packed["fs_max"]
    F = packed["n_filters"]
    cat_p, hid_p, out_p = packed["cat_p"], packed["hid_p"], packed["out_p"]
    V, E = packed["table"].shape
    assert S >= fs_max, "sequence must be at least as long as the largest filter"
    assert B % b_tile == 0, "batch must be divisible by the batch tile"
    n_steps = B // b_tile
    bs_t = b_tile * S

    tokens = text.T.reshape(B * S, 1).astype(jnp.int32)    # permute(1,0)+flatten

    # per-column valid-time threshold: position t feeds branch fs iff t <= S-fs
    thresh = jnp.full((1, cat_p), -1, jnp.int32)           # pad columns: all masked
    for j, fs in enumerate(filter_sizes):
        thresh = thresh.at[0, j * F:(j + 1) * F].set(S - fs)

    kernel = functools.partial(fused_cnn_kernel,
                               B_TILE=b_tile, S=S, FS_MAX=fs_max)
    out = pl.pallas_call(
        kernel,
        out_shape=jax.ShapeDtypeStruct((B, 1, out_p), jnp.float32),
        grid=(n_steps,),
        in_specs=[
            pl.BlockSpec((bs_t, 1), lambda b: (b, 0)),            # tokens (per-tile)
            pl.BlockSpec((V, E), lambda b: (0, 0)),               # table (resident)
            pl.BlockSpec((fs_max, E, cat_p), lambda b: (0, 0, 0)),  # conv weights
            pl.BlockSpec((1, cat_p), lambda b: (0, 0)),           # conv bias
            pl.BlockSpec((1, cat_p), lambda b: (0, 0)),           # time thresholds
            pl.BlockSpec((cat_p, hid_p), lambda b: (0, 0)),       # fc1 w
            pl.BlockSpec((1, hid_p), lambda b: (0, 0)),           # fc1 b
            pl.BlockSpec((hid_p, out_p), lambda b: (0, 0)),       # fc2 w
            pl.BlockSpec((1, out_p), lambda b: (0, 0)),           # fc2 b
        ],
        out_specs=pl.BlockSpec((b_tile, 1, out_p), lambda b: (b, 0, 0)),
        compiler_params=pltpu.CompilerParams(
            dimension_semantics=("parallel",),
            vmem_limit_bytes=32 * 1024 * 1024),
    )(tokens, packed["table"], packed["wconv"], packed["bconv"], thresh,
      packed["fc1_w"], packed["fc1_b"], packed["fc2_w"], packed["fc2_b"])

    return out[:, 0, :packed["out_dim"]]


def cnn_reference(text, params):
    """Pure-JAX f32 reference of the PyTorch forward (correctness guard)."""
    tokens = text.T
    emb = jnp.take(params["embedding"], tokens, axis=0)              # [B, S, E]
    pooled = []
    for fs in params["filter_sizes"]:
        w = params[f"conv_w_{fs}"]                                   # [fs, E, F]
        b = params[f"conv_b_{fs}"]
        l_out = emb.shape[1] - fs + 1
        acc = jnp.zeros((emb.shape[0], l_out, w.shape[2]), jnp.float32)
        for s in range(fs):
            acc = acc + jnp.einsum("ble,ef->blf", emb[:, s:s + l_out, :], w[s])
        acc = jnp.maximum(acc + b, 0.0)
        pooled.append(jnp.max(acc, axis=1))
    cat = jnp.concatenate(pooled, axis=1)
    h = cat @ params["fc1_w"] + params["fc1_b"]
    return h @ params["fc2_w"] + params["fc2_b"]


if __name__ == "__main__":
    vocab_size = 50
    embedding_dim = 32
    n_filters = 16
    filter_sizes = [2, 3, 4]
    output_dim = 4
    batch = 2
    seq_len = 8

    key = jax.random.PRNGKey(0)
    keys = jax.random.split(key, 10)

    params = {
        "filter_sizes": filter_sizes,
        "embedding": jax.random.normal(
            keys[0], (vocab_size, embedding_dim), jnp.float32),
        "fc1_w": 0.1 * jax.random.normal(
            keys[1], (len(filter_sizes) * n_filters, n_filters), jnp.float32),
        "fc1_b": 0.1 * jax.random.normal(keys[2], (n_filters,), jnp.float32),
        "fc2_w": 0.1 * jax.random.normal(
            keys[3], (n_filters, output_dim), jnp.float32),
        "fc2_b": 0.1 * jax.random.normal(keys[4], (output_dim,), jnp.float32),
    }
    for i, fs in enumerate(filter_sizes):
        kw, kb = jax.random.split(keys[5 + i])
        params[f"conv_w_{fs}"] = 0.1 * jax.random.normal(
            kw, (fs, embedding_dim, n_filters), jnp.float32)
        params[f"conv_b_{fs}"] = 0.1 * jax.random.normal(
            kb, (n_filters,), jnp.float32)

    packed = pack_params(params)

    # text in the PyTorch convention: [seq_len, batch]
    text = jax.random.randint(
        keys[9], (seq_len, batch), 0, vocab_size, dtype=jnp.int32)

    # b_tile=1 -> grid=(batch,) so both v7x TensorCores get work; at larger
    # batch choose b_tile so b_tile*seq_len >= 256 to fill the MXU M dim.
    out = cnn_forward(text, packed, b_tile=1)
    jax.block_until_ready(out)
    assert out.shape == (batch, output_dim), out.shape
    assert out.dtype == jnp.float32

    ref = cnn_reference(text, params)
    err = float(jnp.max(jnp.abs(out - ref)))
    # tolerance covers bf16 MXU operands vs the f32 reference
    assert err < 5e-2, f"kernel vs reference mismatch: max abs err = {err}"

    print("KERNEL_OK")
</pallas_src>

<mosaic_0001>
module attributes {stable_mosaic.version = 11 : i64} {
  func.func @fused_cnn_kernel(%arg0: i32, %arg1: memref<8x1xi32, #tpu.memory_space<vmem>>, %arg2: memref<50x32xbf16, #tpu.memory_space<vmem>>, %arg3: memref<4x32x128xbf16, #tpu.memory_space<vmem>>, %arg4: memref<1x128xf32, #tpu.memory_space<vmem>>, %arg5: memref<1x128xi32, #tpu.memory_space<vmem>>, %arg6: memref<128x128xbf16, #tpu.memory_space<vmem>>, %arg7: memref<1x128xf32, #tpu.memory_space<vmem>>, %arg8: memref<128x128xbf16, #tpu.memory_space<vmem>>, %arg9: memref<1x128xf32, #tpu.memory_space<vmem>>, %arg10: memref<1x1x128xf32, #tpu.memory_space<vmem>>) attributes {dimension_semantics = [#tpu.dimension_semantics<parallel>], iteration_bounds = array<i64: 2>, scalar_prefetch = 0 : i64, scratch_operands = 0 : i64, tpu.core_type = #tpu.core_type<tc>, window_params = [{transform_indices = @transform_0, window_bounds = array<i64: 8, 1>}, {pipeline_mode = #tpu.pipeline_mode<synchronous>, transform_indices = @transform_1, window_bounds = array<i64: 50, 32>}, {pipeline_mode = #tpu.pipeline_mode<synchronous>, transform_indices = @transform_2, window_bounds = array<i64: 4, 32, 128>}, {pipeline_mode = #tpu.pipeline_mode<synchronous>, transform_indices = @transform_3, window_bounds = array<i64: 1, 128>}, {pipeline_mode = #tpu.pipeline_mode<synchronous>, transform_indices = @transform_4, window_bounds = array<i64: 1, 128>}, {pipeline_mode = #tpu.pipeline_mode<synchronous>, transform_indices = @transform_5, window_bounds = array<i64: 128, 128>}, {pipeline_mode = #tpu.pipeline_mode<synchronous>, transform_indices = @transform_6, window_bounds = array<i64: 1, 128>}, {pipeline_mode = #tpu.pipeline_mode<synchronous>, transform_indices = @transform_7, window_bounds = array<i64: 128, 128>}, {pipeline_mode = #tpu.pipeline_mode<synchronous>, transform_indices = @transform_8, window_bounds = array<i64: 1, 128>}, {transform_indices = @transform_9, window_bounds = array<i64: 1, 1, 128>}]} {
    %c0 = arith.constant 0 : index
    %c0_0 = arith.constant 0 : index
    %0 = vector.load %arg1[%c0, %c0_0] : memref<8x1xi32, #tpu.memory_space<vmem>>, vector<8x1xi32>
    %1 = tpu.iota {dimensions = array<i32: 1>} : vector<8x50xi32>
    %2 = vector.broadcast %0 : vector<8x1xi32> to vector<8x50xi32>
    %3 = arith.cmpi eq, %1, %2 : vector<8x50xi32>
    %cst = arith.constant 1.000000e+00 : f32
    %cst_1 = arith.constant 0.000000e+00 : f32
    %4 = vector.broadcast %cst : f32 to vector<8x50xf32>
    %5 = vector.broadcast %cst_1 : f32 to vector<8x50xf32>
    %6 = arith.select %3, %4, %5 : vector<8x50xi1>, vector<8x50xf32>
    %7 = arith.truncf %6 : vector<8x50xf32> to vector<8x50xbf16>
    %c0_2 = arith.constant 0 : index
    %c0_3 = arith.constant 0 : index
    %8 = vector.load %arg2[%c0_2, %c0_3] : memref<50x32xbf16, #tpu.memory_space<vmem>>, vector<50x32xbf16>
    %cst_4 = arith.constant dense<0.000000e+00> : vector<8x32xf32>
    %9 = tpu.matmul %7, %8, %cst_4 {dimension_numbers = #tpu.dot_dimension_numbers<[1], [0], [0], [1], [0, 0, 1, 1], [], []>} : vector<8x50xbf16>, vector<50x32xbf16>, vector<8x32xf32> -> vector<8x32xf32>
    %10 = arith.truncf %9 : vector<8x32xf32> to vector<8x32xbf16>
    %cst_5 = arith.constant 0.000000e+00 : bf16
    %11 = vector.broadcast %cst_5 : bf16 to vector<3x32xbf16>
    %12 = tpu.concatenate %10, %11 in 0 : vector<8x32xbf16>, vector<3x32xbf16> -> vector<11x32xbf16>
    %cst_6 = arith.constant 0.000000e+00 : f32
    %13 = vector.broadcast %cst_6 : f32 to vector<8x128xf32>
    %14 = vector.extract_strided_slice %12 {offsets = [0, 0], sizes = [8, 32], strides = [1, 1]} : vector<11x32xbf16> to vector<8x32xbf16>
    %c0_7 = arith.constant 0 : index
    %c0_8 = arith.constant 0 : index
    %c0_9 = arith.constant 0 : index
    %15 = vector.load %arg3[%c0_7, %c0_8, %c0_9] : memref<4x32x128xbf16, #tpu.memory_space<vmem>>, vector<1x32x128xbf16>
    %16 = vector.shape_cast %15 : vector<1x32x128xbf16> to vector<32x128xbf16>
    %cst_10 = arith.constant dense<0.000000e+00> : vector<8x128xf32>
    %17 = tpu.matmul %14, %16, %cst_10 {dimension_numbers = #tpu.dot_dimension_numbers<[1], [0], [0], [1], [0, 0, 1, 1], [], []>} : vector<8x32xbf16>, vector<32x128xbf16>, vector<8x128xf32> -> vector<8x128xf32>
    %18 = arith.addf %13, %17 : vector<8x128xf32>
    %19 = vector.extract_strided_slice %12 {offsets = [1, 0], sizes = [8, 32], strides = [1, 1]} : vector<11x32xbf16> to vector<8x32xbf16>
    %c1 = arith.constant 1 : index
    %c0_11 = arith.constant 0 : index
    %c0_12 = arith.constant 0 : index
    %20 = vector.load %arg3[%c1, %c0_11, %c0_12] : memref<4x32x128xbf16, #tpu.memory_space<vmem>>, vector<1x32x128xbf16>
    %21 = vector.shape_cast %20 : vector<1x32x128xbf16> to vector<32x128xbf16>
    %cst_13 = arith.constant dense<0.000000e+00> : vector<8x128xf32>
    %22 = tpu.matmul %19, %21, %cst_13 {dimension_numbers = #tpu.dot_dimension_numbers<[1], [0], [0], [1], [0, 0, 1, 1], [], []>} : vector<8x32xbf16>, vector<32x128xbf16>, vector<8x128xf32> -> vector<8x128xf32>
    %23 = arith.addf %18, %22 : vector<8x128xf32>
    %24 = vector.extract_strided_slice %12 {offsets = [2, 0], sizes = [8, 32], strides = [1, 1]} : vector<11x32xbf16> to vector<8x32xbf16>
    %c2 = arith.constant 2 : index
    %c0_14 = arith.constant 0 : index
    %c0_15 = arith.constant 0 : index
    %25 = vector.load %arg3[%c2, %c0_14, %c0_15] : memref<4x32x128xbf16, #tpu.memory_space<vmem>>, vector<1x32x128xbf16>
    %26 = vector.shape_cast %25 : vector<1x32x128xbf16> to vector<32x128xbf16>
    %cst_16 = arith.constant dense<0.000000e+00> : vector<8x128xf32>
    %27 = tpu.matmul %24, %26, %cst_16 {dimension_numbers = #tpu.dot_dimension_numbers<[1], [0], [0], [1], [0, 0, 1, 1], [], []>} : vector<8x32xbf16>, vector<32x128xbf16>, vector<8x128xf32> -> vector<8x128xf32>
    %28 = arith.addf %23, %27 : vector<8x128xf32>
    %29 = vector.extract_strided_slice %12 {offsets = [3, 0], sizes = [8, 32], strides = [1, 1]} : vector<11x32xbf16> to vector<8x32xbf16>
    %c3 = arith.constant 3 : index
    %c0_17 = arith.constant 0 : index
    %c0_18 = arith.constant 0 : index
    %30 = vector.load %arg3[%c3, %c0_17, %c0_18] : memref<4x32x128xbf16, #tpu.memory_space<vmem>>, vector<1x32x128xbf16>
    %31 = vector.shape_cast %30 : vector<1x32x128xbf16> to vector<32x128xbf16>
    %cst_19 = arith.constant dense<0.000000e+00> : vector<8x128xf32>
    %32 = tpu.matmul %29, %31, %cst_19 {dimension_numbers = #tpu.dot_dimension_numbers<[1], [0], [0], [1], [0, 0, 1, 1], [], []>} : vector<8x32xbf16>, vector<32x128xbf16>, vector<8x128xf32> -> vector<8x128xf32>
    %33 = arith.addf %28, %32 : vector<8x128xf32>
    %c0_20 = arith.constant 0 : index
    %c0_21 = arith.constant 0 : index
    %34 = vector.load %arg4[%c0_20, %c0_21] : memref<1x128xf32, #tpu.memory_space<vmem>>, vector<1x128xf32>
    %35 = vector.broadcast %34 : vector<1x128xf32> to vector<8x128xf32>
    %36 = arith.addf %33, %35 : vector<8x128xf32>
    %cst_22 = arith.constant 0.000000e+00 : f32
    %37 = vector.broadcast %cst_22 : f32 to vector<8x128xf32>
    %38 = arith.maximumf %36, %37 : vector<8x128xf32>
    %39 = tpu.iota {dimensions = array<i32: 0>} : vector<8x128xi32>
    %c0_23 = arith.constant 0 : index
    %c0_24 = arith.constant 0 : index
    %40 = vector.load %arg5[%c0_23, %c0_24] : memref<1x128xi32, #tpu.memory_space<vmem>>, vector<1x128xi32>
    %41 = vector.broadcast %40 : vector<1x128xi32> to vector<8x128xi32>
    %42 = arith.cmpi sle, %39, %41 : vector<8x128xi32>
    %43 = vector.shape_cast %38 : vector<8x128xf32> to vector<1x8x128xf32>
    %44 = vector.shape_cast %42 : vector<8x128xi1> to vector<1x8x128xi1>
    %cst_25 = arith.constant 0.000000e+00 : f32
    %45 = vector.broadcast %cst_25 : f32 to vector<1x8x128xf32>
    %46 = arith.select %44, %43, %45 : vector<1x8x128xi1>, vector<1x8x128xf32>
    %cst_26 = arith.constant dense<0xFF800000> : vector<1x128xf32>
    %47 = vector.multi_reduction <maximumf>, %46, %cst_26 [1] : vector<1x8x128xf32> to vector<1x128xf32>
    %48 = arith.truncf %47 : vector<1x128xf32> to vector<1x128xbf16>
    %c0_27 = arith.constant 0 : index
    %c0_28 = arith.constant 0 : index
    %49 = vector.load %arg6[%c0_27, %c0_28] : memref<128x128xbf16, #tpu.memory_space<vmem>>, vector<128x128xbf16>
    %cst_29 = arith.constant dense<0.000000e+00> : vector<1x128xf32>
    %50 = tpu.matmul %48, %49, %cst_29 {dimension_numbers = #tpu.dot_dimension_numbers<[1], [0], [0], [1], [0, 0, 1, 1], [], []>} : vector<1x128xbf16>, vector<128x128xbf16>, vector<1x128xf32> -> vector<1x128xf32>
    %c0_30 = arith.constant 0 : index
    %c0_31 = arith.constant 0 : index
    %51 = vector.load %arg7[%c0_30, %c0_31] : memref<1x128xf32, #tpu.memory_space<vmem>>, vector<1x128xf32>
    %52 = arith.addf %50, %51 : vector<1x128xf32>
    %53 = arith.truncf %52 : vector<1x128xf32> to vector<1x128xbf16>
    %c0_32 = arith.constant 0 : index
    %c0_33 = arith.constant 0 : index
    %54 = vector.load %arg8[%c0_32, %c0_33] : memref<128x128xbf16, #tpu.memory_space<vmem>>, vector<128x128xbf16>
    %cst_34 = arith.constant dense<0.000000e+00> : vector<1x128xf32>
    %55 = tpu.matmul %53, %54, %cst_34 {dimension_numbers = #tpu.dot_dimension_numbers<[1], [0], [0], [1], [0, 0, 1, 1], [], []>} : vector<1x128xbf16>, vector<128x128xbf16>, vector<1x128xf32> -> vector<1x128xf32>
    %c0_35 = arith.constant 0 : index
    %c0_36 = arith.constant 0 : index
    %56 = vector.load %arg9[%c0_35, %c0_36] : memref<1x128xf32, #tpu.memory_space<vmem>>, vector<1x128xf32>
    %57 = arith.addf %55, %56 : vector<1x128xf32>
    %58 = vector.shape_cast %57 : vector<1x128xf32> to vector<1x1x128xf32>
    %c0_37 = arith.constant 0 : index
    %c0_38 = arith.constant 0 : index
    %c0_39 = arith.constant 0 : index
    %59 = vector.load %arg10[%c0_37, %c0_38, %c0_39] : memref<1x1x128xf32, #tpu.memory_space<vmem>>, vector<1x1x128xf32>
    tpu.vector_store %arg10[%c0_37, %c0_38, %c0_39], %58 {strides = array<i32>} : memref<1x1x128xf32, #tpu.memory_space<vmem>>, vector<1x1x128xf32>,
    return
  }
  func.func @transform_0(%arg0: i32) -> (i32, i32) {
    %c0_i32 = arith.constant 0 : i32
    %c0_i32_0 = arith.constant 0 : i32
    return %arg0, %c0_i32 : i32, i32
  }
  func.func @transform_1(%arg0: i32) -> (i32, i32) {
    %c0_i32 = arith.constant 0 : i32
    %c0_i32_0 = arith.constant 0 : i32
    %c0_i32_1 = arith.constant 0 : i32
    return %c0_i32, %c0_i32_0 : i32, i32
  }
  func.func @transform_2(%arg0: i32) -> (i32, i32, i32) {
    %c0_i32 = arith.constant 0 : i32
    %c0_i32_0 = arith.constant 0 : i32
    %c0_i32_1 = arith.constant 0 : i32
    %c0_i32_2 = arith.constant 0 : i32
    return %c0_i32, %c0_i32_0, %c0_i32_1 : i32, i32, i32
  }
  func.func @transform_3(%arg0: i32) -> (i32, i32) {
    %c0_i32 = arith.constant 0 : i32
    %c0_i32_0 = arith.constant 0 : i32
    %c0_i32_1 = arith.constant 0 : i32
    return %c0_i32, %c0_i32_0 : i32, i32
  }
  func.func @transform_4(%arg0: i32) -> (i32, i32) {
    %c0_i32 = arith.constant 0 : i32
    %c0_i32_0 = arith.constant 0 : i32
    %c0_i32_1 = arith.constant 0 : i32
    return %c0_i32, %c0_i32_0 : i32, i32
  }
  func.func @transform_5(%arg0: i32) -> (i32, i32) {
    %c0_i32 = arith.constant 0 : i32
    %c0_i32_0 = arith.constant 0 : i32
    %c0_i32_1 = arith.constant 0 : i32
    return %c0_i32, %c0_i32_0 : i32, i32
  }
  func.func @transform_6(%arg0: i32) -> (i32, i32) {
    %c0_i32 = arith.constant 0 : i32
    %c0_i32_0 = arith.constant 0 : i32
    %c0_i32_1 = arith.constant 0 : i32
    return %c0_i32, %c0_i32_0 : i32, i32
  }
  func.func @transform_7(%arg0: i32) -> (i32, i32) {
    %c0_i32 = arith.constant 0 : i32
    %c0_i32_0 = arith.constant 0 : i32
    %c0_i32_1 = arith.constant 0 : i32
    return %c0_i32, %c0_i32_0 : i32, i32
  }
  func.func @transform_8(%arg0: i32) -> (i32, i32) {
    %c0_i32 = arith.constant 0 : i32
    %c0_i32_0 = arith.constant 0 : i32
    %c0_i32_1 = arith.constant 0 : i32
    return %c0_i32, %c0_i32_0 : i32, i32
  }
  func.func @transform_9(%arg0: i32) -> (i32, i32, i32) {
    %c0_i32 = arith.constant 0 : i32
    %c0_i32_0 = arith.constant 0 : i32
    %c0_i32_1 = arith.constant 0 : i32
    return %arg0, %c0_i32, %c0_i32_0 : i32, i32, i32
  }
}

</mosaic_0001>

<bundles_post_ra>
// kernel: tpu_custom_call.1
= control target key start
LH: loop header
LB: loop body
LE: loop exit
PB: predicated region body
PF: predicated region fallthrough
CT: control target
= control target key end

     0   :  { %14 = vsyncpa [#allocation3], 0  ;;  %s1754_s0 = inlined_call_operand.vmem [shape: s32[16,1], index: 0, kind: input, shape index: {}]   ;;  %s1755_s1 = inlined_call_operand.vmem [shape: bf16[50,32], index: 1, kind: input, shape index: {}]   ;;  %s1756_s2 = inlined_call_operand.vmem [shape: bf16[4,32,128], index: 2, kind: input, shape index: {}]   ;;  %s1757_s3 = inlined_call_operand.vmem [shape: f32[1,128], index: 3, kind: input, shape index: {}]   ;;  %s1758_s4 = inlined_call_operand.vmem [shape: s32[1,128], index: 4, kind: input, shape index: {}]   ;;  %s1759_s5 = inlined_call_operand.hbm [shape: bf16[128,128], index: 5, kind: input, shape index: {}]   ;;  %s1760_s6 = inlined_call_operand.vmem [shape: f32[1,128], index: 6, kind: input, shape index: {}]   ;;  %s1761_s7 = inlined_call_operand.hbm [shape: bf16[128,128], index: 7, kind: input, shape index: {}]   ;;  %s1762_s8 = inlined_call_operand.vmem [shape: f32[1,128], index: 8, kind: input, shape index: {}]   ;;  %s1763_s9 = inlined_call_operand.hbm [shape: f32[2,1,128], index: 9, kind: output, shape index: {}]  }
   0x1   :  { %15 = vsyncpa [#allocation6], 0 }
   0x2   :  { %16 = vsyncpa [#allocation4], 0 }
   0x3   :  { %18 = vsyncpa [#allocation4 + $0x1], 0  ;;  %s1485_s30 = smov 0   ;;  %s1487_s10 = smov 0  }
   0x4   :  { %s1489_s11 = smov 0   ;;  %s1491_s12 = smov 0  }
   0x5 LB: > { %1770 = sst [smem:[#allocation11_spill]] %s1421_s11  ;;  %s1506_s13 = sadd.s32 4294967295, %s1425_s12   ;;  %s1425_s12 = sphi %s1491_s12, %s1784_s12   ;;  %s1421_s11 = sphi %s1489_s11, %s1786_s11   ;;  %s1417_s10 = sphi %s1487_s10, %s1788_s10   ;;  %s1413_s30 = sphi %s1485_s30, %s1787_s30  }
   0x6   : > { %s1027_s14 = sadd.s32 4294967294, %s1425_s12   ;;  %s1510_s15 = sadd.s32 1, %s1425_s12  }
   0x7   : > { %1771 = sst [smem:[#allocation12_spill]] %s1510_s15  ;;  %s225_s16 = sadd.s32 1, %s1421_s11 }
   0x8   : > { %s222_s17 = ssub.s32 %s1425_s12, %s1510_s15  ;;  %p235_p0 = scmp.ne.s32.totalorder %s1421_s11, %s1417_s10 }
   0x9   : > { %p223_p1 = scmp.eq.s32.totalorder %s222_s17, 0  ;;  %p236_p2 = scmp.eq.s32.totalorder %s1506_s13, 1 }
   0xa   : > { %p241_p3 = scmp.ne.s32.totalorder %s1417_s10, %s1413_s30  ;;  %p242_p4 = scmp.eq.s32.totalorder %s1027_s14, 1 }
   0xb   : > { %s1521_s18 = scalar_select %p223_p1, %s1421_s11, %s225_s16  }
   0xc   : > { %p1523_p5 = por %p236_p2, %p235_p0  ;;  %p1527_p6 = por %p242_p4, %p241_p3 }
   0xd   : > { %1772 = sst [smem:[#allocation13_spill]] %s1521_s18  ;;  %p1028_p7 = scmp.ge.s32.totalorder %s1425_s12, 1 }
   0xe   : > { %s1773_s19 = scalar_select %p1523_p5, 1, 0 }
   0xf   : > { %s1774_s20 = scalar_select %p1527_p6, 1, 0 }
  0x10   : > { %p249_p8 = scmp.lt.s32.totalorder %s1425_s12, 3  ;;  %p1764_p9 = scmp.eq.s32.totalorder %s1506_s13, 0 }
  0x11   : > { %s1427_s22 = smov [#allocation2]   ;;  %s1428_s25 = smov [#allocation5]  }
  0x12   : > { %p1534_p10 = pnand %p1028_p7, %p249_p8  ;;  %s273_s23 = sshll.u32 %s1427_s22, 4  ;;  %s274_s23 = int_to_ptr.vmem [resolvable:$true] %s273_s23 }
  0x13   : > { %s289_s26 = sshll.u32 %s1428_s25, 4  ;;  %s1299_s29 = scalar_lea.hbm %s1759_s5, 1024  ;;  %s1546_s26 = int_to_ptr.vmem [resolvable:$true] %s289_s26 }
  0x14   : > { %s1775_s21 = scalar_select %p1534_p10, 1, 0 }
  0x15   : > { %p1215_p11 = pneg %p1534_p10  ;;  %p1300_p13 = scmp.ne.s32.totalorder %s1759_s5, %s1299_s29 }
  0x16   : > { %p1306_p3 = scmp.lt.u32.totalorder %s1299_s29, %s1759_s5 }
  0x17   : > { %p1542_p12 = pnand %p1764_p9, %p1215_p11 }
  0x19   : > { %p1301_p0 = pneg %p1542_p12 }
  0x1b   : > { %p1302_p1 = pnand %p1301_p0, %p1300_p13 }
  0x1d   : > { %p1303_p2 = pneg %p1302_p1 }
  0x1f   : > { %p1308_p4 = pnand %p1306_p3, %p1303_p2 }
  0x21   : > { %1311 = shalt.err (!%p1308_p4)
}
  0x22   : > { %s1312_s25 = scalar_lea.vmem %s274_s23, 1024  ;;  %p1320_p9 = scmp.lt.s32.totalorder %s274_s23, %s274_s23 }
  0x23   : > { %p1313_p7 = scmp.ne.s32.totalorder %s274_s23, %s1312_s25  ;;  %p1321_p6 = scmp.lt.s32.totalorder %s1312_s25, %s1312_s25 }
  0x25   : > { %p1315_p8 = pnand %p1313_p7, %p1301_p0  ;;  %p1322_p5 = por %p1321_p6, %p1320_p9 }
  0x27   : > { %p1316_p11 = pneg %p1315_p8 }
  0x29   : > { %p1323_p10 = pnand %p1322_p5, %p1316_p11 }
  0x2b   : > { %1326 = shalt.err (!%p1323_p10)
}
  0x2c   : > { %s1429_s27 = smov 64   ;;  %s1430_s28 = smov 4  }
  0x2d   : > { %1218 = dma.hbm_to_vmem [thread:$0]  (!%p1542_p12), %s1759_s5, 1024, %s274_s23, [#allocation3], %s1429_s27, %s1429_s27, %s1430_s28  }
  0x2e   : > { %s1327_s22 = scalar_lea.hbm %s1761_s7, 1024 }
  0x2f   : > { %p1328_p13 = scmp.ne.s32.totalorder %s1761_s7, %s1327_s22  ;;  %p1334_p9 = scmp.lt.u32.totalorder %s1327_s22, %s1761_s7 }
  0x31   : > { %p1330_p5 = pnand %p1328_p13, %p1301_p0 }
  0x33   : > { %p1331_p6 = pneg %p1330_p5 }
  0x35   : > { %p1336_p10 = pnand %p1334_p9, %p1331_p6 }
  0x37   : > { %1339 = shalt.err (!%p1336_p10)
}
  0x38   : > { %s1340_s23 = scalar_lea.vmem %s1546_s26, 1024  ;;  %p1348_p4 = scmp.lt.s32.totalorder %s1546_s26, %s1546_s26 }
  0x39   : > { %p1341_p1 = scmp.ne.s32.totalorder %s1546_s26, %s1340_s23  ;;  %p1349_p7 = scmp.lt.s32.totalorder %s1340_s23, %s1340_s23 }
  0x3b   : > { %p1343_p2 = pnand %p1341_p1, %p1301_p0  ;;  %p1350_p8 = por %p1349_p7, %p1348_p4 }
  0x3d   : > { %p1344_p3 = pneg %p1343_p2 }
  0x3f   : > { %p1351_p11 = pnand %p1350_p8, %p1344_p3 }
  0x41   : > { %1354 = shalt.err (!%p1351_p11)
}
  0x42   : > { %1221 = dma.hbm_to_vmem [thread:$0]  (!%p1542_p12), %s1761_s7, 1024, %s1546_s26, [#allocation6], %s1429_s27, %s1429_s27, %s1430_s28  }
  0x43   : > { %p1777_p13 = scmp.ne.s32.totalorder %s1775_s21, 0 }
  0x44   : > { %p1778_p5 = scmp.eq.s32.totalorder (!%p1777_p13), %s1506_s13, 0 }
  0x45   : > { %315 = sbr.rel (%p1777_p13) target bundleno = 1134 (0x46e), region = 56 }
  0x4c   : > { %1400 = dma.done.wait (%p1778_p5), [#allocation3], 1024   ;;  %p1779_p0 = pmov %p1778_p5 }
  0x4e   : > { %1402 = vsyncadd (%p1779_p0), [#allocation3], 4294966272  ;;  %p1780_p6 = pmov %p1779_p0 }
  0x4f   : > { %p1781_p9 = pmov %p1779_p0 }
  0x50   : > { %1404 = dma.done.wait (%p1780_p6), [#allocation6], 1024  }
  0x51   : > { %1406 = vsyncadd (%p1781_p9), [#allocation6], 4294966272  ;;  %p353_p10 = scmp.lt.s32.totalorder %s1506_s13, 1  ;;  %v1431_v0 = vmov 0   ;;  %v1432_v1 = vmov 0.0   ;;  %v1271_v3 = vld [vmem:[%s1755_s1] sm:$0xff]   ;;  %v359_v8 = vlaneseq }
  0x52   : > { %1270 = vset.pattern.permute.xlu0 %v1431_v0  ;;  %1121 = vmatprep.subr.bf16.mxu0 %v1432_v1  ;;  %vm399_vm0 = vcmask 1040384   ;;  %v1272_v4 = vld [vmem:[%s1755_s1 + $0x8] sm:$0xff]   ;;  %v1274_v5 = vld [vmem:[%s1755_s1 + $0x18] ss:$0 sps:$4 sm:$0x11]   ;;  %v1273_v6 = vld [vmem:[%s1755_s1 + $0x10] sm:$0xff]  }
  0x53   : > { %s354_s18 = scalar_select %p353_p10, %s1506_s13, 1  ;;  %1133 = vmatprep.subr.bf16.mxu1 %v1432_v1  ;;  %1122 = vmatpush3.bf16.msra.mxu0 %v1271_v3  ;;  %v401_v7 = vsel %vm399_vm0, %v1274_v5, 0  ;;  %vm1433_vm1 = vmmov 0   ;;  %v360_v9 = vand.u32 127, %v359_v8  ;;  %vm395_vm3 = vcmask 408576   ;;  %v1275_v12 = vld [vmem:[%s1756_s2 + $0x20] sm:$0xff]  }
  0x54   : > { %1123 = vmatprep.subr.bf16.mxu0 %v1432_v1  ;;  %1129 = vmatprep.mubr.msk.bf16.mxu0 %vm1433_vm1, %v1432_v1  ;;  %v1276_v14 = vld [vmem:[%s1756_s2 + $0x10] sm:$0xff]   ;;  %v1277_v15 = vld [vmem:[%s1756_s2 + $0x28] sm:$0xff]   ;;  %v1278_v16 = vld [vmem:[%s1756_s2 + $0x18] sm:$0xff]   ;;  %vm444_vm4 = vcmask 1043456   ;;  %vm475_vm5 = vcmask 261120   ;;  %v710_v0 = vshrl.u32 %v359_v8, 7 }
  0x55   : > { %s1035_s21 = sshll.u32 %s354_s18, 3  ;;  %1137 = vmatprep.mubr.msk.bf16.mxu1 %vm1433_vm1, %v1432_v1  ;;  %1134 = vmatpush3.bf16.msra.mxu1 %v1276_v14  ;;  %v1279_v27 = vld [vmem:[%s1756_s2] sm:$0xff]   ;;  %v1280_v29 = vld [vmem:[%s1756_s2 + $0x8] sm:$0xff]   ;;  %v1281_v30 = vld [vmem:[%s1756_s2 + $0x30] sm:$0xff]   ;;  %s351_s28 = sand.u32 1, %s1417_s10  }
  0x56   : > { %s356_s27 = scalar_lea.vmem %s1754_s0, %s1035_s21  ;;  %1135 = vmatprep.subr.bf16.mxu1 %v1432_v1  ;;  %v1282_v31 = vld [vmem:[%s1756_s2 + $0x38] sm:$0xff]   ;;  %v1283_v35 = vld [vmem:[#allocation2] sm:$0xff]   ;;  %v1284_v36 = vld [vmem:[#allocation2 + $0x8] sm:$0xff]   ;;  %s1083_s16 = sshll.u32 %s1506_s13, 4 }
  0x57   : > { %v358_v2 = vld [vmem:[%s356_s27] sm:$0xff]  ;;  %1124 = vmatpush3.bf16.msra.mxu0 %v1272_v4  ;;  %v1285_v37 = vld [vmem:[#allocation2 + $0x10] sm:$0xff]   ;;  %v1286_v38 = vld [vmem:[#allocation2 + $0x18] sm:$0xff]   ;;  %s352_s17 = scalar_lea.vmem [#allocation7], %s351_s28  ;;  %s1712_s11 = scalar_lea.hbm %s1763_s9, %s1083_s16 }
  0x58   : > { %362 = vperm.xlu0 %1270, %v358_v2   ;;  %1125 = vmatprep.subr.bf16.mxu0 %v1432_v1  ;;  %v1287_v39 = vld [vmem:[#allocation2 + $0x20] sm:$0xff]   ;;  %v1288_v40 = vld [vmem:[#allocation2 + $0x28] sm:$0xff]   ;;  %v1289_v41 = vld [vmem:[#allocation2 + $0x30] sm:$0xff]   ;;  %s950_s22 = sshll.u32 %s352_s17, 4  ;;  %s938_s15 = scalar_lea.sflag [#allocation4], %s351_s28  ;;  %s1714_s22 = int_to_ptr.vmem [resolvable:$true] %s950_s22 }
  0x59   : > { %1136 = vmatpush3.bf16.msra.mxu1 %v1278_v16  ;;  %v1290_v42 = vld [vmem:[#allocation2 + $0x38] sm:$0xff]   ;;  %v1291_v43 = vld [vmem:[#allocation5] sm:$0xff]   ;;  %v1292_v44 = vld [vmem:[#allocation5 + $0x8] sm:$0xff]   ;;  %s1355_s13 = scalar_lea.vmem %s1714_s22, 16  ;;  %p1782_p1 = scmp.ne.s32.totalorder %s1773_s19, 0 }
  0x5a   : > { %1141 = vmatprep.subr.bf16.mxu1 %v1432_v1  ;;  %v1293_v45 = vld [vmem:[#allocation5 + $0x10] sm:$0xff]   ;;  %v1294_v46 = vld [vmem:[#allocation5 + $0x18] sm:$0xff]   ;;  %v1295_v47 = vld [vmem:[#allocation5 + $0x20] sm:$0xff]   ;;  %p1356_p12 = scmp.ne.s32.totalorder %s1714_s22, %s1355_s13  ;;  %s1434_s18 = smov [#allocation7]  }
  0x5b   : > { %1126 = vmatpush3.bf16.msra.mxu0 %v1273_v6  ;;  %v1296_v48 = vld [vmem:[#allocation5 + $0x28] sm:$0xff]   ;;  %v1297_v49 = vld [vmem:[#allocation5 + $0x30] sm:$0xff]   ;;  %v1066_v4 = vld [vmem:[%s1758_s4] ss:$0 sm:$0xff]  ;;  %s1359_s21 = sshll.u32 %s1434_s18, 4  ;;  %s1360_s21 = int_to_ptr.vmem [resolvable:$false] %s1359_s21 }
  0x5c   : > { %1127 = vmatprep.subr.bf16.mxu0 %v1432_v1  ;;  %vm716_vm6 = vcmp.le.s32.totalorder %v710_v0, %v1066_v4  ;;  %p1357_p2 = pnand %p1356_p12, %p1782_p1  ;;  %s1361_s24 = scalar_lea.vmem %s1360_s21, 32 }
  0x5d   : > { %p1362_p4 = scmp.lt.s32.totalorder %s1714_s22, %s1360_s21  ;;  %p1363_p7 = scmp.lt.s32.totalorder %s1361_s24, %s1355_s13 }
  0x5e   : > { %p1358_p3 = pneg %p1357_p2 }
  0x5f   : > { %1128 = vmatpush3.bf16.msra.mxu0 %v401_v7  ;;  %p1364_p8 = por %p1363_p7, %p1362_p4 }
  0x60   : > { %1149 = vmatprep.subr.bf16.mxu0 %v1432_v1 }
  0x61   : > { %p1365_p11 = pnand %p1364_p8, %p1358_p3 }
  0xd7   : > { %v363_v10 = vpop.permute.xlu0 %362 }
  0xd8   : > { %vm364_vm2 = vcmp.eq.s32.totalorder %v360_v9, %v363_v10 }
  0xd9   : > { %v365_v11 = vsel %vm364_vm2, 1.0, %v1432_v1 }
  0xda   : > { %v366_v13 = vpack.c.bf16 %v365_v11, %v365_v11 }
  0xdc   : > { %1130 = vmatmul.mubr.msk.bf16.vlgmr.msra.gmra.mrb[0].mxu0 %vm395_vm3, %v366_v13 }
  0xdd   : > { %1150 = vmatpush3.bf16.msra.mxu0 %v1275_v12  ;;  %1153 = vmatprep.mubr.msk.bf16.mxu0 %vm1433_vm1, %v1432_v1 }
  0xde   : > { %1151 = vmatprep.subr.bf16.mxu0 %v1432_v1 }
  0xe1   : > { %1152 = vmatpush3.bf16.msra.mxu0 %v1277_v15 }
  0xe2   : > { %1165 = vmatprep.subr.bf16.mxu0 %v1432_v1 }
 0x1af   : > { %v437_v17 = vpop.f32.mrb[0].mxu0 }
 0x1b0   : > { %v443_v18 = vpack.c.bf16 %v437_v17, %v437_v17  ;;  %v1131_v19 = vpop.f32.mrb[1].mxu0 }
 0x1b1   : > { %v440_v20 = vpop.f32.mrb[2].mxu0  ;;  %v741_v19 = vld [vmem:[%s1760_s6] sm:$0x1] }
 0x1b2   : > { %v447_v21 = vsel %vm444_vm4, %v443_v18, 0  ;;  %v1132_v22 = vpop.f32.mrb[3].mxu0  ;;  %v1298_v18 = vld [vmem:[#allocation5 + $0x38] sm:$0xff]  }
 0x1b3   : > { %v459_v23 = vshll.u32 %v447_v21, 16  ;;  %v579_v24 = vrot.slane %v447_v21, 1  ;;  %v457_v25 = vshrl.u32 %v447_v21, 16 }
 0x1b5   : > { %v461_v26 = vrot.slane %v459_v23, 1  ;;  %1154 = vmatmul.mubr.msk.bf16.vlgmr.msra.gmra.mrb[4].mxu0 %vm475_vm5, %v579_v24  ;;  %v641_v32 = vrot.slane %v457_v25, 1  ;;  %v642_v33 = vrot.slane %v459_v23, 2 }
 0x1b6   : > { %1181 = vmatprep.mubr.msk.bf16.mxu0 %vm1433_vm1, %v1432_v1  ;;  %1166 = vmatpush3.bf16.msra.mxu0 %v1283_v35 }
 0x1b7   : > { %v462_v28 = vor.u32 %v461_v26, %v457_v25  ;;  %v643_v34 = vor.u32 %v642_v33, %v641_v32  ;;  %1167 = vmatprep.subr.bf16.mxu0 %v1432_v1  ;;  %v847_v26 = vld [vmem:[%s1762_s8] sm:$0x1] }
 0x1b9   : > { %1138 = vmatmul.mubr.msk.bf16.vlgmr.msra.gmra.mrb[0].mxu1 %vm475_vm5, %v462_v28 }
 0x1ba   : > { %1142 = vmatpush3.bf16.msra.mxu1 %v1279_v27  ;;  %1145 = vmatprep.mubr.msk.bf16.mxu1 %vm1433_vm1, %v1432_v1 }
 0x1bb   : > { %1143 = vmatprep.subr.bf16.mxu1 %v1432_v1  ;;  %1168 = vmatpush3.bf16.msra.mxu0 %v1284_v36 }
 0x1bc   : > { %1169 = vmatprep.subr.bf16.mxu0 %v1432_v1 }
 0x1be   : > { %1144 = vmatpush3.bf16.msra.mxu1 %v1280_v29 }
 0x1bf   : > { %1157 = vmatprep.subr.bf16.mxu1 %v1432_v1  ;;  %1170 = vmatpush3.bf16.msra.mxu0 %v1285_v37 }
 0x1c0   : > { %1171 = vmatprep.subr.bf16.mxu0 %v1432_v1 }
 0x1c1   : > { %1146 = vmatmul.mubr.msk.bf16.vlgmr.msra.gmra.mrb[4].mxu1 %vm475_vm5, %v447_v21 }
 0x1c2   : > { %1158 = vmatpush3.bf16.msra.mxu1 %v1281_v30  ;;  %1161 = vmatprep.mubr.msk.bf16.mxu1 %vm1433_vm1, %v1432_v1 }
 0x1c3   : > { %1159 = vmatprep.subr.bf16.mxu1 %v1432_v1  ;;  %1172 = vmatpush3.bf16.msra.mxu0 %v1286_v38 }
 0x1c4   : > { %1173 = vmatprep.subr.bf16.mxu0 %v1432_v1 }
 0x1c6   : > { %1160 = vmatpush3.bf16.msra.mxu1 %v1282_v31 }
 0x1c7   : > { %1185 = vmatprep.subr.bf16.mxu1 %v1432_v1  ;;  %1174 = vmatpush3.bf16.msra.mxu0 %v1287_v39 }
 0x1c8   : > { %1175 = vmatprep.subr.bf16.mxu0 %v1432_v1 }
 0x1c9   : > { %1162 = vmatmul.mubr.msk.bf16.vlgmr.msra.gmra.mrb[8].mxu1 %vm475_vm5, %v643_v34 }
 0x1ca   : > { %1201 = vmatprep.mubr.msk.bf16.mxu1 %vm1433_vm1, %v1432_v1  ;;  %1186 = vmatpush3.bf16.msra.mxu1 %v1291_v43 }
 0x1cb   : > { %1176 = vmatpush3.bf16.msra.mxu0 %v1288_v40  ;;  %1187 = vmatprep.subr.bf16.mxu1 %v1432_v1 }
 0x1cc   : > { %1177 = vmatprep.subr.bf16.mxu0 %v1432_v1 }
 0x1ce   : > { %1188 = vmatpush3.bf16.msra.mxu1 %v1292_v44 }
 0x1cf   : > { %1178 = vmatpush3.bf16.msra.mxu0 %v1289_v41  ;;  %1189 = vmatprep.subr.bf16.mxu1 %v1432_v1 }
 0x1d0   : > { %1179 = vmatprep.subr.bf16.mxu0 %v1432_v1 }
 0x1d2   : > { %1190 = vmatpush3.bf16.msra.mxu1 %v1293_v45 }
 0x1d3   : > { %1180 = vmatpush3.bf16.msra.mxu0 %v1290_v42  ;;  %1191 = vmatprep.subr.bf16.mxu1 %v1432_v1 }
 0x1d6   : > { %1192 = vmatpush3.bf16.msra.mxu1 %v1294_v46 }
 0x1d7   : > { %1193 = vmatprep.subr.bf16.mxu1 %v1432_v1 }
 0x1da   : > { %1194 = vmatpush3.bf16.msra.mxu1 %v1295_v47 }
 0x1db   : > { %1195 = vmatprep.subr.bf16.mxu1 %v1432_v1 }
 0x1de   : > { %1196 = vmatpush3.bf16.msra.mxu1 %v1296_v48 }
 0x1df   : > { %1197 = vmatprep.subr.bf16.mxu1 %v1432_v1 }
 0x1e2   : > { %1198 = vmatpush3.bf16.msra.mxu1 %v1297_v49 }
 0x1e3   : > { %1199 = vmatprep.subr.bf16.mxu1 %v1432_v1  ;;  %v1065_v1 = vld [vmem:[%s1757_s3] ss:$0 sm:$0xff] }
 0x1e6   : > { %1200 = vmatpush3.bf16.msra.mxu1 %v1298_v18 }
 0x288   : > { %v629_v50 = vpop.f32.mrb[4].mxu0 }
 0x289   : > { %v1155_v51 = vpop.f32.mrb[5].mxu0 }
 0x28a   : > { %v632_v52 = vpop.f32.mrb[6].mxu0 }
 0x28b   : > { %v1156_v53 = vpop.f32.mrb[7].mxu0 }
 0x28c   : > { %v513_v54 = vpop.f32.mrb[0].mxu1 }
 0x28d   : > { %v1139_v55 = vpop.f32.mrb[1].mxu1 }
 0x28e   : > { %v516_v56 = vpop.f32.mrb[2].mxu1 }
 0x28f   : > { %v1140_v57 = vpop.f32.mrb[3].mxu1 }
 0x294   : > { %v567_v58 = vpop.f32.mrb[4].mxu1 }
 0x295   : > { %v568_v59 = vadd.f32 %v567_v58, %v513_v54  ;;  %v1147_v60 = vpop.f32.mrb[5].mxu1 }
 0x296   : > { %v570_v61 = vpop.f32.mrb[6].mxu1 }
 0x297   : > { %v1148_v62 = vpop.f32.mrb[7].mxu1  ;;  %v635_v63 = vadd.f32 %v629_v50, %v568_v59 }
 0x29c   : > { %v693_v2 = vpop.f32.mrb[8].mxu1 }
 0x29d   : > { %v699_v3 = vadd.f32 %v693_v2, %v635_v63  ;;  %v1163_v5 = vpop.f32.mrb[9].mxu1 }
 0x29e   : > { %v696_v6 = vpop.f32.mrb[10].mxu1 }
 0x29f   : > { %v707_v7 = vadd.f32 %v1065_v1, %v699_v3  ;;  %v1164_v9 = vpop.f32.mrb[11].mxu1 }
 0x2a1   : > { %v708_v10 = vmax.f32 %v707_v7, 0.0 }
 0x2a3   : > { %v717_v11 = vsel %vm716_vm6, %v708_v10, 0.0 }
 0x2a4   : > { %v718_v12 = vrot.slane %v717_v11, 4 }
 0x2a6   : > { %v719_v13 = vmax.f32 %v717_v11, %v718_v12 }
 0x2a8   : > { %v720_v8 = vrot.slane %v719_v13, 2 }
 0x2aa   : > { %v721_v14 = vmax.f32 %v719_v13, %v720_v8 }
 0x2ac   : > { %v722_v15 = vrot.slane %v721_v14, 1 }
 0x2ae   : > { %v723_v16 = vmax.f32 %v721_v14, %v722_v15 }
 0x2b0   : > { %v724_v17 = vpack.c.bf16 %v723_v16, %v723_v16 }
 0x2b2   : > { %1182 = vmatmul.mubr.bf16.vlgmr.msra.gmra.mrb[8].mxu0 %v724_v17 }
 0x385   : > { %v824_v20 = vpop.f32.mrb[8].mxu0 }
 0x386   : > { %v825_v21 = vadd.f32 %v824_v20, %v741_v19  ;;  %v1183_v22 = vpop.f32.mrb[9].mxu0 }
 0x387   : > { %v827_v23 = vpop.f32.mrb[10].mxu0 }
 0x388   : > { %v830_v24 = vpack.c.bf16 %v825_v21, %v825_v21  ;;  %v1184_v25 = vpop.f32.mrb[11].mxu0 }
 0x38a   : > { %1202 = vmatmul.mubr.bf16.vlgmr.msra.gmra.mrb[12].mxu1 %v830_v24 }
 0x45d   : > { %v930_v27 = vpop.f32.mrb[12].mxu1 }
 0x45e   : > { %v931_v28 = vadd.f32 %v930_v27, %v847_v26  ;;  %v1203_v29 = vpop.f32.mrb[13].mxu1 }
 0x45f   : > { %v933_v30 = vpop.f32.mrb[14].mxu1 }
 0x460   : > { %936 = vst [vmem:[%s352_s17] sm:$0x1] %v931_v28  ;;  %v1204_v31 = vpop.f32.mrb[15].mxu1 }
 0x461   : > { %1368 = shalt.err (!%p1365_p11)
}
 0x462   : > { %s1369_s26 = scalar_lea.hbm %s1712_s11, 16  ;;  %s1373_s29 = scalar_lea.hbm %s1763_s9, 32 }
 0x463   : > { %p1370_p13 = scmp.ne.s32.totalorder %s1712_s11, %s1369_s26  ;;  %p1374_p6 = scmp.lt.u32.totalorder %s1712_s11, %s1763_s9 }
 0x464   : > { %p1375_p9 = scmp.lt.u32.totalorder %s1373_s29, %s1369_s26  ;;  %p1377_p12 = scmp.lt.u32.totalorder %s1369_s26, %s1712_s11 }
 0x465   : > { %p1371_p5 = pnand %p1370_p13, %p1782_p1 }
 0x466   : > { %p1376_p10 = por %p1375_p9, %p1374_p6 }
 0x467   : > { %p1372_p0 = pneg %p1371_p5 }
 0x468   : > { %p1378_p2 = por %p1377_p12, %p1376_p10 }
 0x46a   : > { %p1379_p3 = pnand %p1378_p2, %p1372_p0 }
 0x46c   : > { %1382 = shalt.err (!%p1379_p3)
}
 0x46d   : > { %1213 = dma.vmem_to_hbm [thread:$0]  (%p1782_p1), %s1714_s22, 16, %s1712_s11, %s938_s15  }
 0x46e PF: > { %p1230_p4 = scmp.ge.s32.totalorder %s1425_s12, 2  ;;  %s962_s17 = sand.u32 1, %s1413_s30  }
 0x46f   : > { %p1783_p7 = scmp.ne.s32.totalorder %s1774_s20, 0  ;;  %s963_s25 = scalar_lea.sflag [#allocation4], %s962_s17 }
 0x471   : > { %p1223_p8 = pnand %p1230_p4, %p1783_p7 }
 0x473   : > { %1408 = dma.done.wait (!%p1223_p8), %s963_s25, 16  }
 0x474   : > { %1410 = vsyncadd (!%p1223_p8), %s963_s25, 4294967280  ;;  %s1784_s12 = sld [smem:[#allocation12_spill]]  ;;  %s1785_s23 = sld [smem:[#allocation11_spill]] }
 0x475   : > { %s1786_s11 = sld [smem:[#allocation13_spill]]  ;;  %s1787_s30 = smov %s1417_s10 }
 0x47a   : > { %p21_p11 = scmp.ge.s32.totalorder %s1784_s12, 4   ;;  %s1788_s10 = smov %s1785_s23 }
 0x47c   :  { %23 = sbr.rel (!%p21_p11) target bundleno = 5 (0x5), region = 103 }
 0x483   :  { %967 = vsyncpa [#allocation3], 1 }
 0x484   :  { %969 = vsyncpa [#allocation3 + $0x1], 1 }
 0x485   :  { %970 = vsyncpa [#allocation6], 1 }
 0x486   :  { %971 = vsyncpa [#allocation4], 1 }
 0x487   :  { %973 = vsyncpa [#allocation4 + $0x1], 1 }

</bundles_post_ra>
